<compile_context>
chip_gen: v5e
topology: v5e:2x2
jax: 0.10.0
libtpu: 0.0.40
codegen_flags: <defaults>
</compile_context>

<pallas_src>
import jax
import jax.numpy as jnp
from jax.experimental import pallas as pl
from jax.experimental.pallas import tpu as pltpu


def _conv1x1_vpu_kernel(x_ref, w_ref, b_ref, o_ref):
    """VPU path for tiny channel counts.

    x_ref: (1, C_in, T)  VMEM
    w_ref: (C_out, C_in) SMEM (scalar reads)
    b_ref: (C_out,)      SMEM (scalar reads)
    o_ref: (1, C_out, T) VMEM
    """
    c_in = x_ref.shape[1]
    c_out = o_ref.shape[1]
    x = x_ref[0].astype(jnp.float32)          # (C_in, T)
    for o in range(c_out):                    # small, fully unrolled
        acc = x[0:1, :] * w_ref[o, 0]
        for c in range(1, c_in):
            acc = acc + x[c:c + 1, :] * w_ref[o, c]
        o_ref[0, o:o + 1, :] = (acc + b_ref[o]).astype(o_ref.dtype)


def _conv1x1_mxu_kernel(x_ref, w_ref, b_ref, o_ref):
    """MXU path for larger channel counts.

    x_ref: (1, C_in, T) VMEM, w_ref: (C_out, C_in) VMEM, b_ref: (C_out, 1) VMEM
    """
    acc = jax.lax.dot_general(
        w_ref[...], x_ref[0],
        dimension_numbers=(((1,), (0,)), ((), ())),
        preferred_element_type=jnp.float32)
    o_ref[0] = (acc + b_ref[...].astype(jnp.float32)).astype(o_ref.dtype)


def _pick_tile_hw(hw, target=2048):
    # Full extent if it fits (always a legal block), else a multiple of 128.
    if hw <= target:
        return hw
    return (target // 128) * 128


def final_conv(x_nchw, weight, bias, *, tile_hw_target=2048):
    """1x1 Conv2d forward, NCHW in / NCHW out.

    x_nchw: (N, C_in, H, W)
    weight: (C_out, C_in, 1, 1)   (PyTorch conv weight layout)
    bias:   (C_out,)
    returns (N, C_out, H, W)
    """
    N, C_in, H, W = x_nchw.shape
    C_out = weight.shape[0]
    HW = H * W

    x3d = x_nchw.reshape(N, C_in, HW)          # free reshape, no transpose
    w2d = weight.reshape(C_out, C_in)          # NCHW-native: no transpose

    tile_hw = _pick_tile_hw(HW, tile_hw_target)
    grid = (N, pl.cdiv(HW, tile_hw))

    use_vpu = (C_in * C_out) <= 64             # tiny channels -> skip MXU

    if use_vpu:
        kernel = _conv1x1_vpu_kernel
        w_arg = w2d
        b_arg = bias
        w_spec = pl.BlockSpec(memory_space=pltpu.MemorySpace.SMEM)
        b_spec = pl.BlockSpec(memory_space=pltpu.MemorySpace.SMEM)
    else:
        kernel = _conv1x1_mxu_kernel
        w_arg = w2d
        b_arg = bias.reshape(C_out, 1)
        w_spec = pl.BlockSpec((C_out, C_in), lambda n, j: (0, 0))
        b_spec = pl.BlockSpec((C_out, 1), lambda n, j: (0, 0))

    out3d = pl.pallas_call(
        kernel,
        out_shape=jax.ShapeDtypeStruct((N, C_out, HW), x_nchw.dtype),
        grid_spec=pltpu.PrefetchScalarGridSpec(
            num_scalar_prefetch=0,
            grid=grid,
            in_specs=[
                pl.BlockSpec((1, C_in, tile_hw), lambda n, j: (n, 0, j)),
                w_spec,
                b_spec,
            ],
            out_specs=pl.BlockSpec((1, C_out, tile_hw), lambda n, j: (n, 0, j)),
        ),
        compiler_params=pltpu.CompilerParams(
            dimension_semantics=("parallel", "parallel")),
    )(x3d, w_arg, b_arg)

    return out3d.reshape(N, C_out, H, W)


def _reference(x_nchw, weight, bias):
    # pure-JAX reference for correctness check
    w2d = weight.reshape(weight.shape[0], weight.shape[1])  # (C_out, C_in)
    y = jnp.einsum('nchw,oc->nohw', x_nchw, w2d) + bias[None, :, None, None]
    return y


if __name__ == "__main__":
    key = jax.random.PRNGKey(0)
    k_x, k_w, k_b = jax.random.split(key, 3)

    N, C_in, C_out, H, W = 2, 4, 8, 16, 16

    x = jax.random.normal(k_x, (N, C_in, H, W), dtype=jnp.float32)
    # deterministic synthetic parameters (Conv2d(in, out, kernel_size=1))
    weight = jax.random.normal(k_w, (C_out, C_in, 1, 1), dtype=jnp.float32) * 0.1
    bias = jax.random.normal(k_b, (C_out,), dtype=jnp.float32) * 0.1

    y = final_conv(x, weight, bias)
    jax.block_until_ready(y)

    y_ref = _reference(x, weight, bias)
    assert y.shape == (N, C_out, H, W), y.shape
    assert jnp.allclose(y, y_ref, atol=1e-5, rtol=1e-5), "mismatch vs reference"

    print("KERNEL_OK")
</pallas_src>

<mosaic_0001>
module attributes {stable_mosaic.version = 11 : i64} {
  func.func @_conv1x1_vpu_kernel(%arg0: i32, %arg1: i32, %arg2: memref<1x4x256xf32, #tpu.memory_space<vmem>>, %arg3: memref<8x4xf32, #tpu.memory_space<smem>>, %arg4: memref<8xf32, #tpu.memory_space<smem>>, %arg5: memref<1x8x256xf32, #tpu.memory_space<vmem>>) attributes {dimension_semantics = [#tpu.dimension_semantics<parallel>, #tpu.dimension_semantics<parallel>], iteration_bounds = array<i64: 2, 1>, scalar_prefetch = 0 : i64, scratch_operands = 0 : i64, tpu.core_type = #tpu.core_type<tc>, window_params = [{transform_indices = @transform_0, window_bounds = array<i64: 1, 4, 256>}, {transform_indices = @transform_1, window_bounds = array<i64: 8, 4>}, {transform_indices = @transform_2, window_bounds = array<i64: 8>}, {transform_indices = @transform_3, window_bounds = array<i64: 1, 8, 256>}]} {
    %c0 = arith.constant 0 : index
    %c0_0 = arith.constant 0 : index
    %c0_1 = arith.constant 0 : index
    %0 = vector.load %arg2[%c0, %c0_0, %c0_1] : memref<1x4x256xf32, #tpu.memory_space<vmem>>, vector<1x4x256xf32>
    %1 = vector.shape_cast %0 : vector<1x4x256xf32> to vector<4x256xf32>
    %2 = vector.extract_strided_slice %1 {offsets = [0, 0], sizes = [1, 256], strides = [1, 1]} : vector<4x256xf32> to vector<1x256xf32>
    %c0_2 = arith.constant 0 : index
    %c0_3 = arith.constant 0 : index
    %3 = memref.load %arg3[%c0_2, %c0_3] : memref<8x4xf32, #tpu.memory_space<smem>>
    %4 = vector.broadcast %3 : f32 to vector<1x256xf32>
    %5 = arith.mulf %2, %4 : vector<1x256xf32>
    %6 = vector.extract_strided_slice %1 {offsets = [1, 0], sizes = [1, 256], strides = [1, 1]} : vector<4x256xf32> to vector<1x256xf32>
    %c0_4 = arith.constant 0 : index
    %c1 = arith.constant 1 : index
    %7 = memref.load %arg3[%c0_4, %c1] : memref<8x4xf32, #tpu.memory_space<smem>>
    %8 = vector.broadcast %7 : f32 to vector<1x256xf32>
    %9 = arith.mulf %6, %8 : vector<1x256xf32>
    %10 = arith.addf %5, %9 : vector<1x256xf32>
    %11 = vector.extract_strided_slice %1 {offsets = [2, 0], sizes = [1, 256], strides = [1, 1]} : vector<4x256xf32> to vector<1x256xf32>
    %c0_5 = arith.constant 0 : index
    %c2 = arith.constant 2 : index
    %12 = memref.load %arg3[%c0_5, %c2] : memref<8x4xf32, #tpu.memory_space<smem>>
    %13 = vector.broadcast %12 : f32 to vector<1x256xf32>
    %14 = arith.mulf %11, %13 : vector<1x256xf32>
    %15 = arith.addf %10, %14 : vector<1x256xf32>
    %16 = vector.extract_strided_slice %1 {offsets = [3, 0], sizes = [1, 256], strides = [1, 1]} : vector<4x256xf32> to vector<1x256xf32>
    %c0_6 = arith.constant 0 : index
    %c3 = arith.constant 3 : index
    %17 = memref.load %arg3[%c0_6, %c3] : memref<8x4xf32, #tpu.memory_space<smem>>
    %18 = vector.broadcast %17 : f32 to vector<1x256xf32>
    %19 = arith.mulf %16, %18 : vector<1x256xf32>
    %20 = arith.addf %15, %19 : vector<1x256xf32>
    %c0_7 = arith.constant 0 : index
    %21 = memref.load %arg4[%c0_7] : memref<8xf32, #tpu.memory_space<smem>>
    %22 = vector.broadcast %21 : f32 to vector<1x256xf32>
    %23 = arith.addf %20, %22 : vector<1x256xf32>
    %c0_8 = arith.constant 0 : index
    %c0_9 = arith.constant 0 : index
    %c0_10 = arith.constant 0 : index
    %24 = vector.load %arg5[%c0_8, %c0_9, %c0_10] : memref<1x8x256xf32, #tpu.memory_space<vmem>>, vector<1x1x256xf32>
    %25 = vector.shape_cast %24 : vector<1x1x256xf32> to vector<1x256xf32>
    %26 = vector.shape_cast %23 : vector<1x256xf32> to vector<1x1x256xf32>
    tpu.vector_store %arg5[%c0_8, %c0_9, %c0_10], %26 {strides = array<i32>} : memref<1x8x256xf32, #tpu.memory_space<vmem>>, vector<1x1x256xf32>,
    %27 = vector.extract_strided_slice %1 {offsets = [0, 0], sizes = [1, 256], strides = [1, 1]} : vector<4x256xf32> to vector<1x256xf32>
    %c1_11 = arith.constant 1 : index
    %c0_12 = arith.constant 0 : index
    %28 = memref.load %arg3[%c1_11, %c0_12] : memref<8x4xf32, #tpu.memory_space<smem>>
    %29 = vector.broadcast %28 : f32 to vector<1x256xf32>
    %30 = arith.mulf %27, %29 : vector<1x256xf32>
    %31 = vector.extract_strided_slice %1 {offsets = [1, 0], sizes = [1, 256], strides = [1, 1]} : vector<4x256xf32> to vector<1x256xf32>
    %c1_13 = arith.constant 1 : index
    %c1_14 = arith.constant 1 : index
    %32 = memref.load %arg3[%c1_13, %c1_14] : memref<8x4xf32, #tpu.memory_space<smem>>
    %33 = vector.broadcast %32 : f32 to vector<1x256xf32>
    %34 = arith.mulf %31, %33 : vector<1x256xf32>
    %35 = arith.addf %30, %34 : vector<1x256xf32>
    %36 = vector.extract_strided_slice %1 {offsets = [2, 0], sizes = [1, 256], strides = [1, 1]} : vector<4x256xf32> to vector<1x256xf32>
    %c1_15 = arith.constant 1 : index
    %c2_16 = arith.constant 2 : index
    %37 = memref.load %arg3[%c1_15, %c2_16] : memref<8x4xf32, #tpu.memory_space<smem>>
    %38 = vector.broadcast %37 : f32 to vector<1x256xf32>
    %39 = arith.mulf %36, %38 : vector<1x256xf32>
    %40 = arith.addf %35, %39 : vector<1x256xf32>
    %41 = vector.extract_strided_slice %1 {offsets = [3, 0], sizes = [1, 256], strides = [1, 1]} : vector<4x256xf32> to vector<1x256xf32>
    %c1_17 = arith.constant 1 : index
    %c3_18 = arith.constant 3 : index
    %42 = memref.load %arg3[%c1_17, %c3_18] : memref<8x4xf32, #tpu.memory_space<smem>>
    %43 = vector.broadcast %42 : f32 to vector<1x256xf32>
    %44 = arith.mulf %41, %43 : vector<1x256xf32>
    %45 = arith.addf %40, %44 : vector<1x256xf32>
    %c1_19 = arith.constant 1 : index
    %46 = memref.load %arg4[%c1_19] : memref<8xf32, #tpu.memory_space<smem>>
    %47 = vector.broadcast %46 : f32 to vector<1x256xf32>
    %48 = arith.addf %45, %47 : vector<1x256xf32>
    %c0_20 = arith.constant 0 : index
    %c1_21 = arith.constant 1 : index
    %c0_22 = arith.constant 0 : index
    %49 = vector.load %arg5[%c0_20, %c1_21, %c0_22] : memref<1x8x256xf32, #tpu.memory_space<vmem>>, vector<1x1x256xf32>
    %50 = vector.shape_cast %49 : vector<1x1x256xf32> to vector<1x256xf32>
    %51 = vector.shape_cast %48 : vector<1x256xf32> to vector<1x1x256xf32>
    tpu.vector_store %arg5[%c0_20, %c1_21, %c0_22], %51 {strides = array<i32>} : memref<1x8x256xf32, #tpu.memory_space<vmem>>, vector<1x1x256xf32>,
    %52 = vector.extract_strided_slice %1 {offsets = [0, 0], sizes = [1, 256], strides = [1, 1]} : vector<4x256xf32> to vector<1x256xf32>
    %c2_23 = arith.constant 2 : index
    %c0_24 = arith.constant 0 : index
    %53 = memref.load %arg3[%c2_23, %c0_24] : memref<8x4xf32, #tpu.memory_space<smem>>
    %54 = vector.broadcast %53 : f32 to vector<1x256xf32>
    %55 = arith.mulf %52, %54 : vector<1x256xf32>
    %56 = vector.extract_strided_slice %1 {offsets = [1, 0], sizes = [1, 256], strides = [1, 1]} : vector<4x256xf32> to vector<1x256xf32>
    %c2_25 = arith.constant 2 : index
    %c1_26 = arith.constant 1 : index
    %57 = memref.load %arg3[%c2_25, %c1_26] : memref<8x4xf32, #tpu.memory_space<smem>>
    %58 = vector.broadcast %57 : f32 to vector<1x256xf32>
    %59 = arith.mulf %56, %58 : vector<1x256xf32>
    %60 = arith.addf %55, %59 : vector<1x256xf32>
    %61 = vector.extract_strided_slice %1 {offsets = [2, 0], sizes = [1, 256], strides = [1, 1]} : vector<4x256xf32> to vector<1x256xf32>
    %c2_27 = arith.constant 2 : index
    %c2_28 = arith.constant 2 : index
    %62 = memref.load %arg3[%c2_27, %c2_28] : memref<8x4xf32, #tpu.memory_space<smem>>
    %63 = vector.broadcast %62 : f32 to vector<1x256xf32>
    %64 = arith.mulf %61, %63 : vector<1x256xf32>
    %65 = arith.addf %60, %64 : vector<1x256xf32>
    %66 = vector.extract_strided_slice %1 {offsets = [3, 0], sizes = [1, 256], strides = [1, 1]} : vector<4x256xf32> to vector<1x256xf32>
    %c2_29 = arith.constant 2 : index
    %c3_30 = arith.constant 3 : index
    %67 = memref.load %arg3[%c2_29, %c3_30] : memref<8x4xf32, #tpu.memory_space<smem>>
    %68 = vector.broadcast %67 : f32 to vector<1x256xf32>
    %69 = arith.mulf %66, %68 : vector<1x256xf32>
    %70 = arith.addf %65, %69 : vector<1x256xf32>
    %c2_31 = arith.constant 2 : index
    %71 = memref.load %arg4[%c2_31] : memref<8xf32, #tpu.memory_space<smem>>
    %72 = vector.broadcast %71 : f32 to vector<1x256xf32>
    %73 = arith.addf %70, %72 : vector<1x256xf32>
    %c0_32 = arith.constant 0 : index
    %c2_33 = arith.constant 2 : index
    %c0_34 = arith.constant 0 : index
    %74 = vector.load %arg5[%c0_32, %c2_33, %c0_34] : memref<1x8x256xf32, #tpu.memory_space<vmem>>, vector<1x1x256xf32>
    %75 = vector.shape_cast %74 : vector<1x1x256xf32> to vector<1x256xf32>
    %76 = vector.shape_cast %73 : vector<1x256xf32> to vector<1x1x256xf32>
    tpu.vector_store %arg5[%c0_32, %c2_33, %c0_34], %76 {strides = array<i32>} : memref<1x8x256xf32, #tpu.memory_space<vmem>>, vector<1x1x256xf32>,
    %77 = vector.extract_strided_slice %1 {offsets = [0, 0], sizes = [1, 256], strides = [1, 1]} : vector<4x256xf32> to vector<1x256xf32>
    %c3_35 = arith.constant 3 : index
    %c0_36 = arith.constant 0 : index
    %78 = memref.load %arg3[%c3_35, %c0_36] : memref<8x4xf32, #tpu.memory_space<smem>>
    %79 = vector.broadcast %78 : f32 to vector<1x256xf32>
    %80 = arith.mulf %77, %79 : vector<1x256xf32>
    %81 = vector.extract_strided_slice %1 {offsets = [1, 0], sizes = [1, 256], strides = [1, 1]} : vector<4x256xf32> to vector<1x256xf32>
    %c3_37 = arith.constant 3 : index
    %c1_38 = arith.constant 1 : index
    %82 = memref.load %arg3[%c3_37, %c1_38] : memref<8x4xf32, #tpu.memory_space<smem>>
    %83 = vector.broadcast %82 : f32 to vector<1x256xf32>
    %84 = arith.mulf %81, %83 : vector<1x256xf32>
    %85 = arith.addf %80, %84 : vector<1x256xf32>
    %86 = vector.extract_strided_slice %1 {offsets = [2, 0], sizes = [1, 256], strides = [1, 1]} : vector<4x256xf32> to vector<1x256xf32>
    %c3_39 = arith.constant 3 : index
    %c2_40 = arith.constant 2 : index
    %87 = memref.load %arg3[%c3_39, %c2_40] : memref<8x4xf32, #tpu.memory_space<smem>>
    %88 = vector.broadcast %87 : f32 to vector<1x256xf32>
    %89 = arith.mulf %86, %88 : vector<1x256xf32>
    %90 = arith.addf %85, %89 : vector<1x256xf32>
    %91 = vector.extract_strided_slice %1 {offsets = [3, 0], sizes = [1, 256], strides = [1, 1]} : vector<4x256xf32> to vector<1x256xf32>
    %c3_41 = arith.constant 3 : index
    %c3_42 = arith.constant 3 : index
    %92 = memref.load %arg3[%c3_41, %c3_42] : memref<8x4xf32, #tpu.memory_space<smem>>
    %93 = vector.broadcast %92 : f32 to vector<1x256xf32>
    %94 = arith.mulf %91, %93 : vector<1x256xf32>
    %95 = arith.addf %90, %94 : vector<1x256xf32>
    %c3_43 = arith.constant 3 : index
    %96 = memref.load %arg4[%c3_43] : memref<8xf32, #tpu.memory_space<smem>>
    %97 = vector.broadcast %96 : f32 to vector<1x256xf32>
    %98 = arith.addf %95, %97 : vector<1x256xf32>
    %c0_44 = arith.constant 0 : index
    %c3_45 = arith.constant 3 : index
    %c0_46 = arith.constant 0 : index
    %99 = vector.load %arg5[%c0_44, %c3_45, %c0_46] : memref<1x8x256xf32, #tpu.memory_space<vmem>>, vector<1x1x256xf32>
    %100 = vector.shape_cast %99 : vector<1x1x256xf32> to vector<1x256xf32>
    %101 = vector.shape_cast %98 : vector<1x256xf32> to vector<1x1x256xf32>
    tpu.vector_store %arg5[%c0_44, %c3_45, %c0_46], %101 {strides = array<i32>} : memref<1x8x256xf32, #tpu.memory_space<vmem>>, vector<1x1x256xf32>,
    %102 = vector.extract_strided_slice %1 {offsets = [0, 0], sizes = [1, 256], strides = [1, 1]} : vector<4x256xf32> to vector<1x256xf32>
    %c4 = arith.constant 4 : index
    %c0_47 = arith.constant 0 : index
    %103 = memref.load %arg3[%c4, %c0_47] : memref<8x4xf32, #tpu.memory_space<smem>>
    %104 = vector.broadcast %103 : f32 to vector<1x256xf32>
    %105 = arith.mulf %102, %104 : vector<1x256xf32>
    %106 = vector.extract_strided_slice %1 {offsets = [1, 0], sizes = [1, 256], strides = [1, 1]} : vector<4x256xf32> to vector<1x256xf32>
    %c4_48 = arith.constant 4 : index
    %c1_49 = arith.constant 1 : index
    %107 = memref.load %arg3[%c4_48, %c1_49] : memref<8x4xf32, #tpu.memory_space<smem>>
    %108 = vector.broadcast %107 : f32 to vector<1x256xf32>
    %109 = arith.mulf %106, %108 : vector<1x256xf32>
    %110 = arith.addf %105, %109 : vector<1x256xf32>
    %111 = vector.extract_strided_slice %1 {offsets = [2, 0], sizes = [1, 256], strides = [1, 1]} : vector<4x256xf32> to vector<1x256xf32>
    %c4_50 = arith.constant 4 : index
    %c2_51 = arith.constant 2 : index
    %112 = memref.load %arg3[%c4_50, %c2_51] : memref<8x4xf32, #tpu.memory_space<smem>>
    %113 = vector.broadcast %112 : f32 to vector<1x256xf32>
    %114 = arith.mulf %111, %113 : vector<1x256xf32>
    %115 = arith.addf %110, %114 : vector<1x256xf32>
    %116 = vector.extract_strided_slice %1 {offsets = [3, 0], sizes = [1, 256], strides = [1, 1]} : vector<4x256xf32> to vector<1x256xf32>
    %c4_52 = arith.constant 4 : index
    %c3_53 = arith.constant 3 : index
    %117 = memref.load %arg3[%c4_52, %c3_53] : memref<8x4xf32, #tpu.memory_space<smem>>
    %118 = vector.broadcast %117 : f32 to vector<1x256xf32>
    %119 = arith.mulf %116, %118 : vector<1x256xf32>
    %120 = arith.addf %115, %119 : vector<1x256xf32>
    %c4_54 = arith.constant 4 : index
    %121 = memref.load %arg4[%c4_54] : memref<8xf32, #tpu.memory_space<smem>>
    %122 = vector.broadcast %121 : f32 to vector<1x256xf32>
    %123 = arith.addf %120, %122 : vector<1x256xf32>
    %c0_55 = arith.constant 0 : index
    %c4_56 = arith.constant 4 : index
    %c0_57 = arith.constant 0 : index
    %124 = vector.load %arg5[%c0_55, %c4_56, %c0_57] : memref<1x8x256xf32, #tpu.memory_space<vmem>>, vector<1x1x256xf32>
    %125 = vector.shape_cast %124 : vector<1x1x256xf32> to vector<1x256xf32>
    %126 = vector.shape_cast %123 : vector<1x256xf32> to vector<1x1x256xf32>
    tpu.vector_store %arg5[%c0_55, %c4_56, %c0_57], %126 {strides = array<i32>} : memref<1x8x256xf32, #tpu.memory_space<vmem>>, vector<1x1x256xf32>,
    %127 = vector.extract_strided_slice %1 {offsets = [0, 0], sizes = [1, 256], strides = [1, 1]} : vector<4x256xf32> to vector<1x256xf32>
    %c5 = arith.constant 5 : index
    %c0_58 = arith.constant 0 : index
    %128 = memref.load %arg3[%c5, %c0_58] : memref<8x4xf32, #tpu.memory_space<smem>>
    %129 = vector.broadcast %128 : f32 to vector<1x256xf32>
    %130 = arith.mulf %127, %129 : vector<1x256xf32>
    %131 = vector.extract_strided_slice %1 {offsets = [1, 0], sizes = [1, 256], strides = [1, 1]} : vector<4x256xf32> to vector<1x256xf32>
    %c5_59 = arith.constant 5 : index
    %c1_60 = arith.constant 1 : index
    %132 = memref.load %arg3[%c5_59, %c1_60] : memref<8x4xf32, #tpu.memory_space<smem>>
    %133 = vector.broadcast %132 : f32 to vector<1x256xf32>
    %134 = arith.mulf %131, %133 : vector<1x256xf32>
    %135 = arith.addf %130, %134 : vector<1x256xf32>
    %136 = vector.extract_strided_slice %1 {offsets = [2, 0], sizes = [1, 256], strides = [1, 1]} : vector<4x256xf32> to vector<1x256xf32>
    %c5_61 = arith.constant 5 : index
    %c2_62 = arith.constant 2 : index
    %137 = memref.load %arg3[%c5_61, %c2_62] : memref<8x4xf32, #tpu.memory_space<smem>>
    %138 = vector.broadcast %137 : f32 to vector<1x256xf32>
    %139 = arith.mulf %136, %138 : vector<1x256xf32>
    %140 = arith.addf %135, %139 : vector<1x256xf32>
    %141 = vector.extract_strided_slice %1 {offsets = [3, 0], sizes = [1, 256], strides = [1, 1]} : vector<4x256xf32> to vector<1x256xf32>
    %c5_63 = arith.constant 5 : index
    %c3_64 = arith.constant 3 : index
    %142 = memref.load %arg3[%c5_63, %c3_64] : memref<8x4xf32, #tpu.memory_space<smem>>
    %143 = vector.broadcast %142 : f32 to vector<1x256xf32>
    %144 = arith.mulf %141, %143 : vector<1x256xf32>
    %145 = arith.addf %140, %144 : vector<1x256xf32>
    %c5_65 = arith.constant 5 : index
    %146 = memref.load %arg4[%c5_65] : memref<8xf32, #tpu.memory_space<smem>>
    %147 = vector.broadcast %146 : f32 to vector<1x256xf32>
    %148 = arith.addf %145, %147 : vector<1x256xf32>
    %c0_66 = arith.constant 0 : index
    %c5_67 = arith.constant 5 : index
    %c0_68 = arith.constant 0 : index
    %149 = vector.load %arg5[%c0_66, %c5_67, %c0_68] : memref<1x8x256xf32, #tpu.memory_space<vmem>>, vector<1x1x256xf32>
    %150 = vector.shape_cast %149 : vector<1x1x256xf32> to vector<1x256xf32>
    %151 = vector.shape_cast %148 : vector<1x256xf32> to vector<1x1x256xf32>
    tpu.vector_store %arg5[%c0_66, %c5_67, %c0_68], %151 {strides = array<i32>} : memref<1x8x256xf32, #tpu.memory_space<vmem>>, vector<1x1x256xf32>,
    %152 = vector.extract_strided_slice %1 {offsets = [0, 0], sizes = [1, 256], strides = [1, 1]} : vector<4x256xf32> to vector<1x256xf32>
    %c6 = arith.constant 6 : index
    %c0_69 = arith.constant 0 : index
    %153 = memref.load %arg3[%c6, %c0_69] : memref<8x4xf32, #tpu.memory_space<smem>>
    %154 = vector.broadcast %153 : f32 to vector<1x256xf32>
    %155 = arith.mulf %152, %154 : vector<1x256xf32>
    %156 = vector.extract_strided_slice %1 {offsets = [1, 0], sizes = [1, 256], strides = [1, 1]} : vector<4x256xf32> to vector<1x256xf32>
    %c6_70 = arith.constant 6 : index
    %c1_71 = arith.constant 1 : index
    %157 = memref.load %arg3[%c6_70, %c1_71] : memref<8x4xf32, #tpu.memory_space<smem>>
    %158 = vector.broadcast %157 : f32 to vector<1x256xf32>
    %159 = arith.mulf %156, %158 : vector<1x256xf32>
    %160 = arith.addf %155, %159 : vector<1x256xf32>
    %161 = vector.extract_strided_slice %1 {offsets = [2, 0], sizes = [1, 256], strides = [1, 1]} : vector<4x256xf32> to vector<1x256xf32>
    %c6_72 = arith.constant 6 : index
    %c2_73 = arith.constant 2 : index
    %162 = memref.load %arg3[%c6_72, %c2_73] : memref<8x4xf32, #tpu.memory_space<smem>>
    %163 = vector.broadcast %162 : f32 to vector<1x256xf32>
    %164 = arith.mulf %161, %163 : vector<1x256xf32>
    %165 = arith.addf %160, %164 : vector<1x256xf32>
    %166 = vector.extract_strided_slice %1 {offsets = [3, 0], sizes = [1, 256], strides = [1, 1]} : vector<4x256xf32> to vector<1x256xf32>
    %c6_74 = arith.constant 6 : index
    %c3_75 = arith.constant 3 : index
    %167 = memref.load %arg3[%c6_74, %c3_75] : memref<8x4xf32, #tpu.memory_space<smem>>
    %168 = vector.broadcast %167 : f32 to vector<1x256xf32>
    %169 = arith.mulf %166, %168 : vector<1x256xf32>
    %170 = arith.addf %165, %169 : vector<1x256xf32>
    %c6_76 = arith.constant 6 : index
    %171 = memref.load %arg4[%c6_76] : memref<8xf32, #tpu.memory_space<smem>>
    %172 = vector.broadcast %171 : f32 to vector<1x256xf32>
    %173 = arith.addf %170, %172 : vector<1x256xf32>
    %c0_77 = arith.constant 0 : index
    %c6_78 = arith.constant 6 : index
    %c0_79 = arith.constant 0 : index
    %174 = vector.load %arg5[%c0_77, %c6_78, %c0_79] : memref<1x8x256xf32, #tpu.memory_space<vmem>>, vector<1x1x256xf32>
    %175 = vector.shape_cast %174 : vector<1x1x256xf32> to vector<1x256xf32>
    %176 = vector.shape_cast %173 : vector<1x256xf32> to vector<1x1x256xf32>
    tpu.vector_store %arg5[%c0_77, %c6_78, %c0_79], %176 {strides = array<i32>} : memref<1x8x256xf32, #tpu.memory_space<vmem>>, vector<1x1x256xf32>,
    %177 = vector.extract_strided_slice %1 {offsets = [0, 0], sizes = [1, 256], strides = [1, 1]} : vector<4x256xf32> to vector<1x256xf32>
    %c7 = arith.constant 7 : index
    %c0_80 = arith.constant 0 : index
    %178 = memref.load %arg3[%c7, %c0_80] : memref<8x4xf32, #tpu.memory_space<smem>>
    %179 = vector.broadcast %178 : f32 to vector<1x256xf32>
    %180 = arith.mulf %177, %179 : vector<1x256xf32>
    %181 = vector.extract_strided_slice %1 {offsets = [1, 0], sizes = [1, 256], strides = [1, 1]} : vector<4x256xf32> to vector<1x256xf32>
    %c7_81 = arith.constant 7 : index
    %c1_82 = arith.constant 1 : index
    %182 = memref.load %arg3[%c7_81, %c1_82] : memref<8x4xf32, #tpu.memory_space<smem>>
    %183 = vector.broadcast %182 : f32 to vector<1x256xf32>
    %184 = arith.mulf %181, %183 : vector<1x256xf32>
    %185 = arith.addf %180, %184 : vector<1x256xf32>
    %186 = vector.extract_strided_slice %1 {offsets = [2, 0], sizes = [1, 256], strides = [1, 1]} : vector<4x256xf32> to vector<1x256xf32>
    %c7_83 = arith.constant 7 : index
    %c2_84 = arith.constant 2 : index
    %187 = memref.load %arg3[%c7_83, %c2_84] : memref<8x4xf32, #tpu.memory_space<smem>>
    %188 = vector.broadcast %187 : f32 to vector<1x256xf32>
    %189 = arith.mulf %186, %188 : vector<1x256xf32>
    %190 = arith.addf %185, %189 : vector<1x256xf32>
    %191 = vector.extract_strided_slice %1 {offsets = [3, 0], sizes = [1, 256], strides = [1, 1]} : vector<4x256xf32> to vector<1x256xf32>
    %c7_85 = arith.constant 7 : index
    %c3_86 = arith.constant 3 : index
    %192 = memref.load %arg3[%c7_85, %c3_86] : memref<8x4xf32, #tpu.memory_space<smem>>
    %193 = vector.broadcast %192 : f32 to vector<1x256xf32>
    %194 = arith.mulf %191, %193 : vector<1x256xf32>
    %195 = arith.addf %190, %194 : vector<1x256xf32>
    %c7_87 = arith.constant 7 : index
    %196 = memref.load %arg4[%c7_87] : memref<8xf32, #tpu.memory_space<smem>>
    %197 = vector.broadcast %196 : f32 to vector<1x256xf32>
    %198 = arith.addf %195, %197 : vector<1x256xf32>
    %c0_88 = arith.constant 0 : index
    %c7_89 = arith.constant 7 : index
    %c0_90 = arith.constant 0 : index
    %199 = vector.load %arg5[%c0_88, %c7_89, %c0_90] : memref<1x8x256xf32, #tpu.memory_space<vmem>>, vector<1x1x256xf32>
    %200 = vector.shape_cast %199 : vector<1x1x256xf32> to vector<1x256xf32>
    %201 = vector.shape_cast %198 : vector<1x256xf32> to vector<1x1x256xf32>
    tpu.vector_store %arg5[%c0_88, %c7_89, %c0_90], %201 {strides = array<i32>} : memref<1x8x256xf32, #tpu.memory_space<vmem>>, vector<1x1x256xf32>,
    return
  }
  func.func @transform_0(%arg0: i32, %arg1: i32) -> (i32, i32, i32) {
    %c0_i32 = arith.constant 0 : i32
    %c0_i32_0 = arith.constant 0 : i32
    return %arg0, %c0_i32, %arg1 : i32, i32, i32
  }
  func.func @transform_1(%arg0: i32, %arg1: i32) -> (i32, i32) {
    %c0_i32 = arith.constant 0 : i32
    %c0_i32_0 = arith.constant 0 : i32
    %c0_i32_1 = arith.constant 0 : i32
    return %c0_i32, %c0_i32_0 : i32, i32
  }
  func.func @transform_2(%arg0: i32, %arg1: i32) -> i32 {
    %c0_i32 = arith.constant 0 : i32
    %c0_i32_0 = arith.constant 0 : i32
    return %c0_i32 : i32
  }
  func.func @transform_3(%arg0: i32, %arg1: i32) -> (i32, i32, i32) {
    %c0_i32 = arith.constant 0 : i32
    %c0_i32_0 = arith.constant 0 : i32
    return %arg0, %c0_i32, %arg1 : i32, i32, i32
  }
}

</mosaic_0001>

<bundles_post_ra>
// kernel: tpu_custom_call.1
= control target key start
LH: loop header
LB: loop body
LE: loop exit
PB: predicated region body
PF: predicated region fallthrough
CT: control target
= control target key end

     0   :  { %8 = vsyncpa [#allocation3], 0  ;;  %s1313_s0 = inlined_call_operand.hbm [shape: f32[2,4,256], index: 0, kind: input, shape index: {}]   ;;  %s1314_s1 = inlined_call_operand.vmem [shape: f32[8,4], index: 1, kind: input, shape index: {}]   ;;  %s1315_s2 = inlined_call_operand.vmem [shape: f32[8], index: 2, kind: input, shape index: {}]   ;;  %s1316_s3 = inlined_call_operand.hbm [shape: f32[2,8,256], index: 3, kind: output, shape index: {}]  }
   0x1   :  { %10 = vsyncpa [#allocation3 + $0x1], 0 }
   0x2   :  { %11 = vsyncpa [#allocation5], 0 }
   0x3   :  { %12 = vsyncpa [#allocation8], 0 }
   0x4   :  { %13 = vsyncpa [#allocation4], 0 }
   0x5   :  { %15 = vsyncpa [#allocation4 + $0x1], 0  ;;  %s1009_s12 = smov 0   ;;  %s1011_s13 = smov 0  }
   0x6   :  { %s1013_s14 = smov 0   ;;  %s1015_s15 = smov 0  }
   0x7   :  { %s1017_s16 = smov 0   ;;  %s1019_s17 = smov 0  }
   0x8 LB: > { %s662_s18 = sadd.s32 4294967295, %s985_s17   ;;  %s663_s19 = sadd.s32 4294967294, %s985_s17   ;;  %s985_s17 = sphi %s1019_s17, %s21_s17   ;;  %s981_s16 = sphi %s1017_s16, %s1328_s16   ;;  %s977_s15 = sphi %s1015_s15, %s1327_s15   ;;  %s973_s14 = sphi %s1013_s14, %s1326_s14   ;;  %s969_s13 = sphi %s1011_s13, %s1325_s13   ;;  %s965_s12 = sphi %s1009_s12, %s1324_s12  }
   0x9   : > { %p55_p0 = scmp.ne.s32.totalorder %s969_s13, %s965_s12  ;;  %p1043_p1 = scmp.eq.s32.totalorder %s662_s18, 0 }
   0xa   : > { %p129_p2 = scmp.eq.s32.totalorder %s663_s19, 1  ;;  %p664_p4 = scmp.ge.s32.totalorder %s985_s17, 1 }
   0xb   : > { %p1049_p3 = por %p1043_p1, %p55_p0  ;;  %p136_p6 = scmp.lt.s32.totalorder %s985_s17, 3 }
   0xc   : > { %p1054_p5 = por %p129_p2, %p55_p0  ;;  %s148_s25 = sshll.u32 %s1314_s1, 4  ;;  %s149_s25 = int_to_ptr.vmem [resolvable:$true] %s148_s25 }
   0xd   : > { %p1062_p7 = pnand %p664_p4, %p136_p6  ;;  %p667_p8 = scmp.ge.s32.totalorder %s985_s17, 2 }
   0xe   : > { %s158_s29 = sshll.u32 %s1315_s2, 4  ;;  %s987_s30 = smov [#allocation6]   ;;  %s159_s29 = int_to_ptr.vmem [resolvable:$true] %s158_s29 }
   0xf   : > { %p764_p9 = pneg %p1062_p7  ;;  %s988_s4 = smov [#allocation7]  }
  0x10   : > { %p123_p11 = scmp.eq.s32.totalorder %s662_s18, 1  ;;  %s33_s5 = sadd.s32 1, %s981_s16 }
  0x11   : > { %p765_p10 = pnand %p764_p9, %p1043_p1  ;;  %p35_p12 = scmp.ge.s32.totalorder %s33_s5, 2 }
  0x12   : > { %s42_s6 = sadd.s32 1, %s973_s14  ;;  %p49_p13 = scmp.ne.s32.totalorder %s973_s14, %s969_s13 }
  0x13   : > { %767 = dma.vmem_to_smem (!%p765_p10), %s149_s25, 128, %s987_s30, [#allocation5]  }
  0x14   : > { %770 = dma.vmem_to_smem (!%p765_p10), %s159_s29, 16, %s988_s4, [#allocation8]  }
  0x15   : > { %p50_p0 = scmp.eq.s32.totalorder %s985_s17, 0  ;;  %s1330_s5 = smov (%p35_p12, %s33_s5), 0 }
  0x16   : > { %p1081_p2 = por %p123_p11, %p49_p13  ;;  %p781_p4 = scmp.lt.s32.totalorder %s985_s17, 2 }
  0x17   : > { %s37_s8 = ssub.s32 %s981_s16, %s1330_s5  ;;  %s169_s9 = sand.u32 1, %s973_s14  }
  0x18   : > { %p40_p6 = scmp.eq.s32.totalorder %s37_s8, 0  ;;  %p51_p9 = por %p50_p0, %p49_p13 }
  0x19   : > { %s668_s10 = sshll.u32 %s169_s9, 3  ;;  %s750_s11 = sshll.u32 %s981_s16, 3 }
  0x1a   : > { %s1091_s18 = scalar_select %p40_p6, %s973_s14, %s42_s6  }
  0x1b   : > { %s180_s24 = scalar_lea.hbm %s1313_s0, %s750_s11  ;;  %s173_s27 = scalar_lea.vmem [#allocation2], %s668_s10 }
  0x1c   : > { %s182_s25 = sshll.u32 %s180_s24, 4  ;;  %s184_s28 = sshll.u32 %s173_s27, 4  ;;  %s183_s25 = int_to_ptr.hbm [resolvable:$true] %s182_s25  ;;  %s185_s28 = int_to_ptr.vmem [resolvable:$true] %s184_s28 }
  0x1d   : > { %p772_p10 = pnand %p781_p4, %p51_p9  ;;  %s170_s29 = scalar_lea.sflag [#allocation3], %s169_s9 }
  0x1e   : > { %193 = sbr.rel (%p1062_p7) target bundleno = 104 (0x68), region = 32  ;;  %s1101_s30 = sand.u32 (!%p1062_p7), 1, %s969_s13  }
  0x1f   : > { %774 = dma.hbm_to_vmem [thread:$0]  (!%p772_p10), %s183_s25, 128, %s185_s28, %s170_s29  }
  0x20   : > { %s672_s4 = sshll.u32 (!%p1062_p7), %s1101_s30, 3  ;;  %s196_s6 = scalar_lea.sflag (!%p1062_p7), [#allocation3], %s1101_s30 }
  0x21   : > { %s199_s8 = scalar_lea.vmem (!%p1062_p7), [#allocation2], %s672_s4 }
  0x23   : > { %948 = dma.done.wait (%p1049_p3), %s196_s6, 128  }
  0x24   : > { %950 = vsyncadd (%p1049_p3), %s196_s6, 4294967168 }
  0x25   : > { %952 = dma.done.wait (%p1043_p1), [#allocation5], 128  }
  0x26   : > { %954 = vsyncadd (%p1043_p1), [#allocation5], 4294967168 }
  0x27   : > { %956 = dma.done.wait (%p1043_p1), [#allocation8], 16  }
  0x28   : > { %958 = vsyncadd (%p1043_p1), [#allocation8], 4294967280 }
  0x29   : > { %215 = sfence }
  0x2a   : > { %s237_s26 = sld [smem:[#allocation6]]  ;;  %v1119_v0 = vld [vmem:[%s199_s8] sm:$0xff]  ;;  %v272_v22 = vlaneseq  ;;  %vm269_vm0 = vcmask 1040384  }
  0x2b   : > { %s676_s9 = sld [smem:[#allocation6 + $0x1]] }
  0x2c   : > { %s678_s10 = sld [smem:[#allocation6 + $0x2]]  ;;  %vm1153_vm1 = vcmp.lt.s32.totalorder %v272_v22, 256 }
  0x2d   : > { %s680_s11 = sld [smem:[#allocation6 + $0x3]] }
  0x2e   : > { %s1117_s19 = sld [smem:[#allocation7]] }
  0x2f   : > { %s682_s21 = sld [smem:[#allocation6 + $0x80]] }
  0x30   : > { %v238_v1 = vstv %s237_s26  ;;  %s683_s23 = sld [smem:[#allocation6 + $0x81]] }
  0x31   : > { %v241_v2 = vstv %s676_s9  ;;  %s685_s24 = sld [smem:[#allocation6 + $0x82]]  ;;  %v239_v3 = vmul.f32 %v238_v1, %v1119_v0  ;;  %s675_s9 = sshll.u32 %s1101_s30, 4 }
  0x32   : > { %v242_v4 = vmul.f32 %v241_v2, %v1119_v0  ;;  %v249_v5 = vstv %s678_s10  ;;  %s687_s20 = sld [smem:[#allocation6 + $0x83]] }
  0x33   : > { %v250_v6 = vmul.f32 %v249_v5, %v1119_v0  ;;  %v257_v7 = vstv %s680_s11  ;;  %s1124_s25 = sld [smem:[#allocation7 + $0x1]] }
  0x34   : > { %v677_v8 = vrot.slane %v242_v4, 9  ;;  %v258_v9 = vmul.f32 %v257_v7, %v1119_v0  ;;  %s1127_s27 = sld [smem:[#allocation6 + $0x100]]  ;;  %v265_v21 = vstv %s1117_s19 }
  0x35   : > { %v679_v10 = vrot.slane %v250_v6, 10  ;;  %v279_v11 = vstv %s682_s21  ;;  %s692_s28 = sld [smem:[#allocation6 + $0x101]] }
  0x36   : > { %v247_v12 = vadd.f32 %v677_v8, %v239_v3  ;;  %v681_v13 = vrot.slane %v258_v9, 11  ;;  %v282_v14 = vstv %s683_s23  ;;  %s1129_s29 = sld [smem:[#allocation6 + $0x102]]  ;;  %v280_v15 = vmul.f32 %v279_v11, %v1119_v0 }
  0x37   : > { %v283_v16 = vmul.f32 %v282_v14, %v1119_v0  ;;  %v290_v17 = vstv %s685_s24  ;;  %s1133_s4 = sld [smem:[#allocation6 + $0x103]] }
  0x38   : > { %v255_v18 = vadd.f32 %v679_v10, %v247_v12  ;;  %v291_v19 = vmul.f32 %v290_v17, %v1119_v0  ;;  %v298_v20 = vstv %s687_s20  ;;  %s1136_s6 = sld [smem:[#allocation7 + $0x2]]  ;;  %s1171_s20 = scalar_lea.vmem [#allocation9], %s675_s9 }
  0x39   : > { %v684_v23 = vrot.slane %v283_v16, 9  ;;  %v299_v24 = vmul.f32 %v298_v20, %v1119_v0  ;;  %s1140_s8 = sld [smem:[#allocation6 + $0x180]]  ;;  %v306_v40 = vstv %s1124_s25 }
  0x3a   : > { %v263_v25 = vadd.f32 %v681_v13, %v255_v18  ;;  %v686_v26 = vrot.slane %v291_v19, 10  ;;  %v316_v27 = vstv %s1127_s27  ;;  %s1143_s26 = sld [smem:[#allocation6 + $0x181]] }
  0x3b   : > { %v288_v28 = vadd.f32 %v684_v23, %v280_v15  ;;  %v688_v29 = vrot.slane %v299_v24, 11  ;;  %v319_v30 = vstv %s692_s28  ;;  %s1146_s10 = sld [smem:[#allocation6 + $0x182]]  ;;  %v317_v32 = vmul.f32 %v316_v27, %v1119_v0 }
  0x3c   : > { %v266_v31 = vadd.f32 %v265_v21, %v263_v25  ;;  %v320_v33 = vmul.f32 %v319_v30, %v1119_v0  ;;  %v327_v34 = vstv %s1129_s29  ;;  %s1151_s11 = sld [smem:[#allocation6 + $0x183]] }
  0x3d   : > { %v296_v36 = vadd.f32 %v686_v26, %v288_v28  ;;  %v328_v37 = vmul.f32 %v327_v34, %v1119_v0  ;;  %v335_v38 = vstv %s1133_s4  ;;  %s1159_s19 = sld [smem:[#allocation7 + $0x3]] }
  0x3e   : > { %v268_v39 = vrot.slane %v266_v31, 3  ;;  %v693_v41 = vrot.slane %v320_v33, 9  ;;  %v336_v42 = vmul.f32 %v335_v38, %v1119_v0  ;;  %s1163_s21 = sld [smem:[#allocation6 + $0x200]]  ;;  %v343_v58 = vstv %s1136_s6 }
  0x3f   : > { %v304_v43 = vadd.f32 %v688_v29, %v296_v36  ;;  %v695_v44 = vrot.slane %v328_v37, 10  ;;  %v353_v45 = vstv %s1140_s8  ;;  %s1166_s23 = sld [smem:[#allocation6 + $0x201]] }
  0x40   : > { %v270_v46 = vsel %vm269_vm0, %v266_v31, %v268_v39  ;;  %v325_v47 = vadd.f32 %v693_v41, %v317_v32  ;;  %v697_v48 = vrot.slane %v336_v42, 11  ;;  %s1169_s24 = sld [smem:[#allocation6 + $0x202]]  ;;  %v354_v50 = vmul.f32 %v353_v45, %v1119_v0 }
  0x41   : > { %276 = vst.msk [vmem:[%s1171_s20] ss:$8 sm:$0x3] %vm1153_vm1, %v270_v46  ;;  %v307_v49 = vadd.f32 %v306_v40, %v304_v43  ;;  %v356_v51 = vstv %s1143_s26  ;;  %v364_v52 = vstv %s1146_s10  ;;  %s1179_s25 = sld [smem:[#allocation6 + $0x203]] }
  0x42   : > { %v333_v53 = vadd.f32 %v695_v44, %v325_v47  ;;  %v357_v54 = vmul.f32 %v356_v51, %v1119_v0  ;;  %v365_v55 = vmul.f32 %v364_v52, %v1119_v0  ;;  %v372_v56 = vstv %s1151_s11  ;;  %s1184_s27 = sld [smem:[#allocation7 + $0x4]] }
  0x43   : > { %v309_v57 = vrot.slane %v307_v49, 3  ;;  %v373_v59 = vmul.f32 %v372_v56, %v1119_v0  ;;  %s1188_s28 = sld [smem:[#allocation6 + $0x280]]  ;;  %v380_v15 = vstv %s1159_s19 }
  0x44   : > { %v341_v60 = vadd.f32 %v697_v48, %v333_v53  ;;  %v702_v61 = vrot.slane %v357_v54, 9  ;;  %v704_v62 = vrot.slane %v365_v55, 10  ;;  %v390_v63 = vstv %s1163_s21  ;;  %s1191_s29 = sld [smem:[#allocation6 + $0x281]] }
  0x45   : > { %v310_v1 = vsel %vm269_vm0, %v307_v49, %v309_v57  ;;  %v706_v2 = vrot.slane %v373_v59, 11  ;;  %v391_v3 = vmul.f32 %v390_v63, %v1119_v0  ;;  %v393_v4 = vstv %s1166_s23  ;;  %s1196_s4 = sld [smem:[#allocation6 + $0x282]] }
  0x46   : > { %690 = vst.msk [vmem:[%s1171_s20 + $0x1] ss:$8 sm:$0x3] %vm1153_vm1, %v310_v1  ;;  %v344_v5 = vadd.f32 %v343_v58, %v341_v60  ;;  %v362_v6 = vadd.f32 %v702_v61, %v354_v50  ;;  %v394_v7 = vmul.f32 %v393_v4, %v1119_v0  ;;  %v401_v8 = vstv %s1169_s24  ;;  %s1203_s6 = sld [smem:[#allocation6 + $0x283]] }
  0x47   : > { %v402_v9 = vmul.f32 %v401_v8, %v1119_v0  ;;  %v409_v10 = vstv %s1179_s25  ;;  %s1207_s8 = sld [smem:[#allocation7 + $0x5]] }
  0x48   : > { %v346_v11 = vrot.slane %v344_v5, 3  ;;  %v370_v12 = vadd.f32 %v704_v62, %v362_v6  ;;  %v711_v13 = vrot.slane %v394_v7, 9  ;;  %v410_v14 = vmul.f32 %v409_v10, %v1119_v0  ;;  %s1210_s26 = sld [smem:[#allocation6 + $0x300]] }
  0x49   : > { %v713_v16 = vrot.slane %v402_v9, 10  ;;  %v427_v17 = vstv %s1188_s28  ;;  %s1214_s9 = sld [smem:[#allocation6 + $0x301]]  ;;  %v417_v29 = vstv %s1184_s27  ;;  %s751_s28 = sshll.u32 %s977_s15, 4 }
  0x4a   : > { %v347_v18 = vsel %vm269_vm0, %v344_v5, %v346_v11  ;;  %v378_v19 = vadd.f32 %v706_v2, %v370_v12  ;;  %v399_v20 = vadd.f32 %v711_v13, %v391_v3  ;;  %v715_v21 = vrot.slane %v410_v14, 11  ;;  %s1217_s10 = sld [smem:[#allocation6 + $0x302]]  ;;  %s553_s15 = sshll.u32 %s1171_s20, 4  ;;  %s554_s15 = int_to_ptr.vmem [resolvable:$true] %s553_s15 }
  0x4b   : > { %699 = vst.msk [vmem:[%s1171_s20 + $0x2] ss:$8 sm:$0x3] %vm1153_vm1, %v347_v18  ;;  %v428_v22 = vmul.f32 %v427_v17, %v1119_v0  ;;  %v430_v23 = vstv %s1191_s29  ;;  %v438_v24 = vstv %s1196_s4  ;;  %s1225_s11 = sld [smem:[#allocation6 + $0x303]] }
  0x4c   : > { %v381_v25 = vadd.f32 %v380_v15, %v378_v19  ;;  %v407_v26 = vadd.f32 %v713_v16, %v399_v20  ;;  %v431_v27 = vmul.f32 %v430_v23, %v1119_v0  ;;  %v439_v28 = vmul.f32 %v438_v24, %v1119_v0  ;;  %s1229_s19 = sld [smem:[#allocation7 + $0x6]] }
  0x4d   : > { %v446_v30 = vstv %s1203_s6  ;;  %s1233_s21 = sld [smem:[#allocation6 + $0x380]]  ;;  %v454_v51 = vstv %s1207_s8  ;;  %s551_s6 = scalar_lea.hbm %s1316_s3, %s751_s28 }
  0x4e   : > { %v383_v31 = vrot.slane %v381_v25, 3  ;;  %v415_v32 = vadd.f32 %v715_v21, %v407_v26  ;;  %v720_v33 = vrot.slane %v431_v27, 9  ;;  %v722_v34 = vrot.slane %v439_v28, 10  ;;  %s1235_s23 = sld [smem:[#allocation6 + $0x381]]  ;;  %s555_s8 = sshll.u32 %s551_s6, 4  ;;  %s556_s8 = int_to_ptr.hbm [resolvable:$true] %s555_s8 }
  0x4f   : > { %v447_v36 = vmul.f32 %v446_v30, %v1119_v0  ;;  %v464_v37 = vstv %s1210_s26  ;;  %v467_v38 = vstv %s1214_s9  ;;  %s739_s24 = sld [smem:[#allocation6 + $0x382]]  ;;  %s538_s26 = scalar_lea.sflag [#allocation4], %s1101_s30 }
  0x50   : > { %v384_v39 = vsel %vm269_vm0, %v381_v25, %v383_v31  ;;  %v418_v40 = vadd.f32 %v417_v29, %v415_v32  ;;  %v436_v41 = vadd.f32 %v720_v33, %v428_v22  ;;  %v465_v42 = vmul.f32 %v464_v37, %v1119_v0  ;;  %s741_s25 = sld [smem:[#allocation6 + $0x383]]  ;;  %s909_s9 = sshra.s32 %s556_s8, 4  ;;  %s910_s9 = int_to_ptr.hbm [resolvable:$true] %s909_s9 }
  0x51   : > { %708 = vst.msk [vmem:[%s1171_s20 + $0x3] ss:$8 sm:$0x3] %vm1153_vm1, %v384_v39  ;;  %v724_v43 = vrot.slane %v447_v36, 11  ;;  %v468_v44 = vmul.f32 %v467_v38, %v1119_v0  ;;  %v475_v45 = vstv %s1217_s10  ;;  %v483_v46 = vstv %s1225_s11  ;;  %s743_s27 = sld [smem:[#allocation7 + $0x7]]  ;;  %s911_s10 = scalar_lea.hbm %s910_s9, 16 }
  0x52   : > { %v420_v47 = vrot.slane %v418_v40, 3  ;;  %v444_v48 = vadd.f32 %v722_v34, %v436_v41  ;;  %v476_v49 = vmul.f32 %v475_v45, %v1119_v0  ;;  %v484_v50 = vmul.f32 %v483_v46, %v1119_v0  ;;  %p912_p1 = scmp.ne.s32.totalorder %s910_s9, %s911_s10  ;;  %p916_p11 = scmp.lt.s32.totalorder %s910_s9, %s1316_s3 }
  0x53   : > { %v729_v52 = vrot.slane %v468_v44, 9  ;;  %v501_v53 = vstv %s1233_s21  ;;  %v491_v6 = vstv %s1229_s19  ;;  %s915_s21 = scalar_lea.hbm %s1316_s3, 32 }
  0x54   : > { %v421_v54 = vsel %vm269_vm0, %v418_v40, %v420_v47  ;;  %v452_v55 = vadd.f32 %v724_v43, %v444_v48  ;;  %v731_v56 = vrot.slane %v476_v49, 10  ;;  %v733_v57 = vrot.slane %v484_v50, 11  ;;  %p913_p3 = pnand %p912_p1, %p1081_p2  ;;  %p917_p12 = scmp.lt.s32.totalorder %s915_s21, %s911_s10 }
  0x55   : > { %717 = vst.msk [vmem:[%s1171_s20 + $0x4] ss:$8 sm:$0x3] %vm1153_vm1, %v421_v54  ;;  %v473_v58 = vadd.f32 %v729_v52, %v465_v42  ;;  %v502_v59 = vmul.f32 %v501_v53, %v1119_v0  ;;  %v504_v60 = vstv %s1235_s23  ;;  %v512_v61 = vstv %s739_s24 }
  0x56   : > { %v455_v62 = vadd.f32 %v454_v51, %v452_v55  ;;  %v505_v63 = vmul.f32 %v504_v60, %v1119_v0  ;;  %v513_v1 = vmul.f32 %v512_v61, %v1119_v0  ;;  %v520_v2 = vstv %s741_s25  ;;  %p914_p7 = pneg %p913_p3  ;;  %p918_p13 = por %p917_p12, %p916_p11 }
  0x57   : > { %v481_v3 = vadd.f32 %v731_v56, %v473_v58  ;;  %v521_v4 = vmul.f32 %v520_v2, %v1119_v0  ;;  %v528_v15 = vstv %s743_s27 }
  0x58   : > { %v457_v5 = vrot.slane %v455_v62, 3  ;;  %v738_v7 = vrot.slane %v505_v63, 9  ;;  %v740_v8 = vrot.slane %v513_v1, 10  ;;  %p919_p0 = pnand %p918_p13, %p914_p7 }
  0x59   : > { %v489_v9 = vadd.f32 %v733_v57, %v481_v3  ;;  %v742_v12 = vrot.slane %v521_v4, 11 }
  0x5a   : > { %v458_v10 = vsel %vm269_vm0, %v455_v62, %v457_v5  ;;  %v510_v11 = vadd.f32 %v738_v7, %v502_v59 }
  0x5b   : > { %726 = vst.msk [vmem:[%s1171_s20 + $0x5] ss:$8 sm:$0x3] %vm1153_vm1, %v458_v10  ;;  %v492_v13 = vadd.f32 %v491_v6, %v489_v9 }
  0x5c   : > { %v518_v14 = vadd.f32 %v740_v8, %v510_v11 }
  0x5d   : > { %v494_v0 = vrot.slane %v492_v13, 3 }
  0x5e   : > { %v526_v16 = vadd.f32 %v742_v12, %v518_v14 }
  0x5f   : > { %v495_v17 = vsel %vm269_vm0, %v492_v13, %v494_v0 }
  0x60   : > { %735 = vst.msk [vmem:[%s1171_s20 + $0x6] ss:$8 sm:$0x3] %vm1153_vm1, %v495_v17  ;;  %v529_v18 = vadd.f32 %v528_v15, %v526_v16 }
  0x62   : > { %v531_v19 = vrot.slane %v529_v18, 3 }
  0x64   : > { %v532_v20 = vsel %vm269_vm0, %v529_v18, %v531_v19 }
  0x65   : > { %744 = vst.msk [vmem:[%s1171_s20 + $0x7] ss:$8 sm:$0x3] %vm1153_vm1, %v532_v20 }
  0x66   : > { %922 = shalt.err (!%p919_p0)
}
  0x67   : > { %762 = dma.vmem_to_hbm [thread:$0]  (%p1081_p2), %s554_s15, 256, %s556_s8, %s538_s26  }
  0x68 PF: > { %s567_s30 = sand.u32 1, %s965_s12   ;;  %p776_p4 = pnand %p667_p8, %p1054_p5 }
  0x69   : > { %s568_s20 = scalar_lea.sflag [#allocation4], %s567_s30 }
  0x6a   : > { %p777_p6 = pneg %p776_p4 }
  0x6c   : > { %960 = dma.done.wait (%p777_p6), %s568_s20, 256  }
  0x6d   : > { %962 = vsyncadd (%p777_p6), %s568_s20, 4294967040  ;;  %s21_s17 = sadd.s32 1, %s985_s17   ;;  %s1324_s12 = smov %s969_s13 }
  0x6e   : > { %p18_p9 = scmp.ge.s32.totalorder %s21_s17, 4   ;;  %s1325_s13 = smov %s973_s14 }
  0x6f   : > { %s1326_s14 = smov %s1091_s18  ;;  %s1327_s15 = smov %s981_s16 }
  0x70   : > { %s1328_s16 = smov %s1330_s5  ;;  %20 = sbr.rel (!%p18_p9) target bundleno = 8 (0x8), region = 93 }
  0x75   :  { %574 = vsyncpa [#allocation3], 1 }
  0x76   :  { %576 = vsyncpa [#allocation3 + $0x1], 1 }
  0x77   :  { %577 = vsyncpa [#allocation4], 1 }
  0x78   :  { %579 = vsyncpa [#allocation4 + $0x1], 1 }
  0x79   :  { %580 = vsyncpa [#allocation5], 1 }
  0x7a   :  { %582 = vsyncpa [#allocation5 + $0x1], 1 }
  0x7b   :  { %583 = vsyncpa [#allocation8], 1 }

</bundles_post_ra>
